<compile_context>
chip_gen: v5e
topology: v5e:2x2
jax: 0.10.0
libtpu: 0.0.40
codegen_flags: <defaults>
</compile_context>

<pallas_src>
import jax
import jax.numpy as jnp
from jax import lax
from jax.experimental import pallas as pl
from jax.experimental.pallas import tpu as pltpu


def _round_up(a, b):
    return (a + b - 1) // b * b


def _matmul_bias_kernel(w_ref, p_ref, b_ref, o_ref):
    """One lane-dense matmul tile: (Cout, CKK) @ (CKK, tile_n) + bias.

    w_ref : VMEM (Cout, CKK)      flattened conv weights, (kh, kw, ci) order
    p_ref : VMEM (CKK, tile_n)    im2col patches tile (columns = (b, ho, wo))
    b_ref : VMEM (Cout, 1)        effective bias, float32 (time channel folded in)
    o_ref : VMEM (Cout, tile_n)   output tile, lane-dense (multiple of 128 lanes)
    """
    acc = jnp.dot(w_ref[...], p_ref[...], preferred_element_type=jnp.float32)
    acc = acc + b_ref[...]                       # f32 (Cout, 1) lane-broadcast
    o_ref[...] = acc.astype(o_ref.dtype)


def concat_conv2d(t, x_nchw, w_oihw, bias, *, stride=1, padding=0):
    """ConcatConv2d forward. t: scalar, x_nchw: (B, Cin, H, W), w: (Cout, Cin+1, K, K)."""
    assert stride == 1 and padding == 0, "kernel implements the module defaults"
    B, Cin, H, W = x_nchw.shape
    Cout, Cin1, K, K2 = w_oihw.shape
    assert K == K2 and Cin1 == Cin + 1
    Ho, Wo = H - K + 1, W - K + 1
    CKK = K * K * Cin
    N = B * Ho * Wo
    itemsize = jnp.dtype(x_nchw.dtype).itemsize

    # Fold the constant time channel into a FLOAT32 bias:
    #   out[:, co, :, :] += t * sum_{kh,kw} w[co, 0, kh, kw]
    t = jnp.asarray(t, dtype=jnp.float32)
    bias_eff = bias.astype(jnp.float32) + t * jnp.sum(
        w_oihw[:, 0, :, :].astype(jnp.float32), axis=(1, 2))            # (Cout,)
    bias_col = bias_eff.reshape(Cout, 1)                                # f32, no downcast

    # Flatten the real-input weights once; (kh, kw, ci) ordering matches the
    # patches row order below.
    w_mat = jnp.transpose(w_oihw[:, 1:, :, :], (0, 2, 3, 1)).reshape(Cout, CKK)
    w_mat = w_mat.astype(x_nchw.dtype)

    # Wrapper-side im2col: a single one-time relayout done by XLA in HBM.
    # Rows ordered (kh, kw, ci); columns ordered (b, ho, wo).
    taps = [x_nchw[:, :, kh:kh + Ho, kw:kw + Wo]                        # (B, Cin, Ho, Wo)
            for kh in range(K) for kw in range(K)]
    patches = jnp.stack(taps, axis=0)                                   # (K*K, B, Cin, Ho, Wo)
    patches = jnp.transpose(patches, (0, 2, 1, 3, 4))                   # (K*K, Cin, B, Ho, Wo)
    patches = patches.reshape(CKK, N).astype(x_nchw.dtype)

    # Lane tile: multiple of 128 (unmasked stores); pad N so the tile divides it.
    tile_n = min(_round_up(N, 128), 4096)
    Npad = _round_up(N, tile_n)
    if Npad != N:
        patches = jnp.pad(patches, ((0, 0), (0, Npad - N)))

    grid = (Npad // tile_n,)
    cost = pl.CostEstimate(
        flops=2 * Cout * CKK * N,
        transcendentals=0,
        bytes_accessed=(CKK * Npad + Cout * CKK + Cout * Npad) * itemsize + Cout * 4,
    )

    out_flat = pl.pallas_call(
        _matmul_bias_kernel,
        out_shape=jax.ShapeDtypeStruct((Cout, Npad), x_nchw.dtype),
        grid=grid,
        in_specs=[
            pl.BlockSpec((Cout, CKK), lambda n: (0, 0)),     # weights (resident)
            pl.BlockSpec((CKK, tile_n), lambda n: (0, n)),   # patches tile
            pl.BlockSpec((Cout, 1), lambda n: (0, 0)),       # f32 bias (resident)
        ],
        out_specs=pl.BlockSpec((Cout, tile_n), lambda n: (0, n)),
        compiler_params=pltpu.CompilerParams(
            dimension_semantics=("parallel",),   # only matters when grid > 1
        ),
        cost_estimate=cost,
    )(w_mat, patches, bias_col)

    # Drop lane padding, then one tiny transpose back to NCHW.
    out = out_flat[:, :N].reshape(Cout, B, Ho, Wo)
    return jnp.transpose(out, (1, 0, 2, 3))


def _reference(t, x_nchw, w_oihw, bias):
    """Plain-JAX reference matching torch semantics (valid conv, NCHW)."""
    B, Cin, H, W = x_nchw.shape
    tt = jnp.full((B, 1, H, W), t, dtype=x_nchw.dtype)
    ttx = jnp.concatenate([tt, x_nchw], axis=1)
    out = lax.conv_general_dilated(
        ttx, w_oihw, window_strides=(1, 1), padding="VALID",
        dimension_numbers=("NCHW", "OIHW", "NCHW"))
    return out + bias.reshape(1, -1, 1, 1)


if __name__ == "__main__":
    # Small shapes consistent with the module: B=2, dim_in=4, H=W=16, dim_out=4, ksize=3.
    B, Cin, H, W = 2, 4, 16, 16
    Cout, K = 4, 3

    key = jax.random.PRNGKey(0)
    kx, kw, kb, kt = jax.random.split(key, 4)

    x = jax.random.normal(kx, (B, Cin, H, W), dtype=jnp.float32)
    # Deterministic synthetic parameters (shapes match nn.Conv2d(dim_in+1, dim_out, 3)).
    fan_in = (Cin + 1) * K * K
    bound = 1.0 / float(fan_in) ** 0.5
    w = jax.random.uniform(kw, (Cout, Cin + 1, K, K), jnp.float32, -bound, bound)
    b = jax.random.uniform(kb, (Cout,), jnp.float32, -bound, bound)
    t = jax.random.uniform(kt, (), jnp.float32)

    out = concat_conv2d(t, x, w, b)
    out = jax.block_until_ready(out)

    ref = _reference(t, x, w, b)
    assert out.shape == (B, Cout, H - K + 1, W - K + 1)
    assert jnp.allclose(out, ref, atol=1e-4, rtol=1e-4), "mismatch vs reference conv"

    print("KERNEL_OK")
</pallas_src>

<mosaic_0001>
module attributes {stable_mosaic.version = 11 : i64} {
  func.func @_matmul_bias_kernel(%arg0: i32, %arg1: memref<4x36xf32, #tpu.memory_space<vmem>>, %arg2: memref<36x512xf32, #tpu.memory_space<vmem>>, %arg3: memref<4x1xf32, #tpu.memory_space<vmem>>, %arg4: memref<4x512xf32, #tpu.memory_space<vmem>>) attributes {dimension_semantics = [#tpu.dimension_semantics<parallel>], iteration_bounds = array<i64: 1>, scalar_prefetch = 0 : i64, scratch_operands = 0 : i64, tpu.core_type = #tpu.core_type<tc>, window_params = [{pipeline_mode = #tpu.pipeline_mode<synchronous>, transform_indices = @transform_0, window_bounds = array<i64: 4, 36>}, {transform_indices = @transform_1, window_bounds = array<i64: 36, 512>}, {pipeline_mode = #tpu.pipeline_mode<synchronous>, transform_indices = @transform_2, window_bounds = array<i64: 4, 1>}, {transform_indices = @transform_3, window_bounds = array<i64: 4, 512>}]} {
    %c0 = arith.constant 0 : index
    %c0_0 = arith.constant 0 : index
    %0 = vector.load %arg1[%c0, %c0_0] : memref<4x36xf32, #tpu.memory_space<vmem>>, vector<4x36xf32>
    %c0_1 = arith.constant 0 : index
    %c0_2 = arith.constant 0 : index
    %1 = vector.load %arg2[%c0_1, %c0_2] : memref<36x512xf32, #tpu.memory_space<vmem>>, vector<36x512xf32>
    %cst = arith.constant dense<0.000000e+00> : vector<4x512xf32>
    %2 = tpu.matmul %0, %1, %cst {dimension_numbers = #tpu.dot_dimension_numbers<[1], [0], [0], [1], [0, 0, 1, 1], [], []>} : vector<4x36xf32>, vector<36x512xf32>, vector<4x512xf32> -> vector<4x512xf32>
    %c0_3 = arith.constant 0 : index
    %c0_4 = arith.constant 0 : index
    %3 = vector.load %arg3[%c0_3, %c0_4] : memref<4x1xf32, #tpu.memory_space<vmem>>, vector<4x1xf32>
    %4 = vector.broadcast %3 : vector<4x1xf32> to vector<4x512xf32>
    %5 = arith.addf %2, %4 : vector<4x512xf32>
    %c0_5 = arith.constant 0 : index
    %c0_6 = arith.constant 0 : index
    %6 = vector.load %arg4[%c0_5, %c0_6] : memref<4x512xf32, #tpu.memory_space<vmem>>, vector<4x512xf32>
    tpu.vector_store %arg4[%c0_5, %c0_6], %5 {strides = array<i32>} : memref<4x512xf32, #tpu.memory_space<vmem>>, vector<4x512xf32>,
    return
  }
  func.func @transform_0(%arg0: i32) -> (i32, i32) {
    %c0_i32 = arith.constant 0 : i32
    %c0_i32_0 = arith.constant 0 : i32
    %c0_i32_1 = arith.constant 0 : i32
    return %c0_i32, %c0_i32_0 : i32, i32
  }
  func.func @transform_1(%arg0: i32) -> (i32, i32) {
    %c0_i32 = arith.constant 0 : i32
    %c0_i32_0 = arith.constant 0 : i32
    return %c0_i32, %arg0 : i32, i32
  }
  func.func @transform_2(%arg0: i32) -> (i32, i32) {
    %c0_i32 = arith.constant 0 : i32
    %c0_i32_0 = arith.constant 0 : i32
    %c0_i32_1 = arith.constant 0 : i32
    return %c0_i32, %c0_i32_0 : i32, i32
  }
  func.func @transform_3(%arg0: i32) -> (i32, i32) {
    %c0_i32 = arith.constant 0 : i32
    %c0_i32_0 = arith.constant 0 : i32
    return %c0_i32, %arg0 : i32, i32
  }
}

</mosaic_0001>

<bundles_post_ra>
// kernel: tpu_custom_call.1
= control target key start
LH: loop header
LB: loop body
LE: loop exit
PB: predicated region body
PF: predicated region fallthrough
CT: control target
= control target key end

     0   :  { %8 = vsyncpa [#allocation3], 0  ;;  %s297_s0 = inlined_call_operand.vmem [shape: f32[4,36], index: 0, kind: input, shape index: {}]   ;;  %s298_s1 = inlined_call_operand.hbm [shape: f32[36,512], index: 1, kind: input, shape index: {}]   ;;  %s299_s2 = inlined_call_operand.vmem [shape: f32[4,1], index: 2, kind: input, shape index: {}]   ;;  %s300_s3 = inlined_call_operand.hbm [shape: f32[4,512], index: 3, kind: output, shape index: {}]  }
   0x1   :  { %9 = vsyncpa [#allocation4], 0  ;;  %s16_s14 = sshll.u32 %s298_s1, 4  ;;  %s250_s15 = smov [#allocation2]   ;;  %s17_s14 = int_to_ptr.hbm [resolvable:$true] %s16_s14 }
   0x2   :  { %s18_s16 = sshll.u32 %s250_s15, 4  ;;  %s251_s17 = smov 512   ;;  %s19_s16 = int_to_ptr.vmem [resolvable:$true] %s18_s16 }
   0x3   :  { %s252_s18 = smov 32  }
   0x4   :  { %24 = dma.hbm_to_vmem [thread:$0]  %s17_s14, 2560, %s19_s16, [#allocation3], %s251_s17, %s251_s17, %s252_s18  }
   0x5   :  { %246 = dma.done.wait [#allocation3], 2560  }
   0x6   :  { %247 = vsyncadd [#allocation3], 4294964736  ;;  %v253_v0 = vmov 0   ;;  %vm62_vm0 = vcmask 1043456   ;;  %v50_v1 = vld [vmem:[#allocation2 + $0x90] sm:$0xf] }
   0x7   :  { %197 = vset.pattern.permute.xlu0 %v253_v0  ;;  %v51_v2 = vld [vmem:[#allocation2 + $0x98] sm:$0xf]  ;;  %v46_v3 = vld [vmem:[#allocation2 + $0x70] sm:$0xff]  ;;  %188 = vmatpush.msk.msra.mxu2 %vm62_vm0, %v50_v1  ;;  %v49_v5 = vld [vmem:[#allocation2 + $0x88] sm:$0xf]  ;;  %vm58_vm1 = vcmask 293888  }
   0x8   :  { %190 = vmatpush.msk.msra.mxu3 %vm62_vm0, %v51_v2  ;;  %v47_v4 = vld [vmem:[#allocation2 + $0x78] sm:$0xff]  ;;  %v42_v6 = vld [vmem:[#allocation2 + $0x50] sm:$0xff]  ;;  %186 = vmatpush.msk.msra.mxu1 %vm62_vm0, %v49_v5  ;;  %v48_v8 = vld [vmem:[#allocation2 + $0x80] sm:$0xf]  ;;  %s174_s24 = sshll.u32 %s300_s3, 4  ;;  %s175_s24 = int_to_ptr.hbm [resolvable:$true] %s174_s24 }
   0x9   :  { %v43_v7 = vld [vmem:[#allocation2 + $0x58] sm:$0xff]  ;;  %v45_v9 = vld [vmem:[#allocation2 + $0x68] sm:$0xff]  ;;  %127 = vmatpush.msra.mxu2 %v46_v3  ;;  %v44_v10 = vld [vmem:[#allocation2 + $0x60] sm:$0xff]  ;;  %184 = vmatpush.msk.msra.mxu0 %vm62_vm0, %v48_v8 }
   0xa   :  { %147 = vmatpush.msra.mxu3 %v47_v4  ;;  %107 = vmatpush.msra.mxu1 %v45_v9  ;;  %v38_v11 = vld [vmem:[#allocation2 + $0x30] sm:$0xff]  ;;  %v39_v12 = vld [vmem:[#allocation2 + $0x38] sm:$0xff]  ;;  %v41_v13 = vld [vmem:[#allocation2 + $0x48] sm:$0xff] }
   0xb   :  { %128 = vmatpush.msra.mxu2 %v42_v6  ;;  %v40_v14 = vld [vmem:[#allocation2 + $0x40] sm:$0xff]  ;;  %v37_v15 = vld [vmem:[#allocation2 + $0x28] sm:$0xff]  ;;  %87 = vmatpush.msra.mxu0 %v44_v10  ;;  %v34_v16 = vld [vmem:[#allocation2 + $0x10] sm:$0xff] }
   0xc   :  { %148 = vmatpush.msra.mxu3 %v43_v7  ;;  %108 = vmatpush.msra.mxu1 %v41_v13  ;;  %v35_v17 = vld [vmem:[#allocation2 + $0x18] sm:$0xff]  ;;  %v31_v18 = vld [vmem:[%s297_s0] sm:$0xf]  ;;  %v33_v20 = vld [vmem:[#allocation2 + $0x8] sm:$0xff]  ;;  %s254_s0 = smov [#allocation5]  }
   0xd   :  { %129 = vmatpush.msra.mxu2 %v38_v11  ;;  %88 = vmatpush.msra.mxu0 %v40_v14  ;;  %v36_v19 = vld [vmem:[#allocation2 + $0x20] sm:$0xff] }
   0xe   :  { %149 = vmatpush.msra.mxu3 %v39_v12  ;;  %109 = vmatpush.msra.mxu1 %v37_v15  ;;  %v52_v21 = vld [vmem:[%s299_s2] sm:$0xf]  ;;  %s172_s2 = sshll.u32 %s254_s0, 4  ;;  %s173_s2 = int_to_ptr.vmem [resolvable:$true] %s172_s2 }
   0xf   :  { %130 = vmatpush.msra.mxu2 %v34_v16  ;;  %v32_v22 = vld [vmem:[#allocation2] sm:$0xff]  ;;  %89 = vmatpush.msra.mxu0 %v36_v19 }
  0x10   :  { %150 = vmatpush.msra.mxu3 %v35_v17  ;;  %189 = vmatmul.msk.f32.vlgmr.msra.gmra.mxu2 %vm58_vm1, %v31_v18 }
  0x11   :  { %191 = vmatmul.msk.f32.vlgmr.msra.gmra.mxu3 %vm58_vm1, %v31_v18  ;;  %110 = vmatpush.msra.mxu1 %v33_v20 }
  0x12   :  { %187 = vmatmul.msk.f32.vlgmr.msra.gmra.mxu1 %vm58_vm1, %v31_v18  ;;  %55 = vperm.xlu0 %197, %v52_v21  }
  0x13   :  { %90 = vmatpush.msra.mxu0 %v32_v22 }
  0x14   :  { %185 = vmatmul.msk.f32.vlgmr.msra.gmra.mxu0 %vm58_vm1, %v31_v18 }
  0x84   :  { %v56_v23 = vpop.permute.xlu0 %55 }
  0x8f   :  { %v112_v24 = vpop.f32.mrf.mxu1 }
  0x90   :  { %v113_v25 = vadd.f32 %v112_v24, %v56_v23 }
  0x91   :  { %v92_v26 = vpop.f32.mrf.mxu0 }
  0x92   :  { %v159_v27 = vrot.slane %v113_v25, 4  ;;  %v93_v28 = vadd.f32 %v92_v26, %v56_v23 }
  0x93   :  { %v132_v29 = vpop.f32.mrf.mxu2 }
  0x94   :  { %v152_v30 = vpop.f32.mrf.mxu3  ;;  %v161_v31 = vsel %vm62_vm0, %v93_v28, %v159_v27  ;;  %v133_v33 = vadd.f32 %v132_v29, %v56_v23 }
  0x95   :  { %v153_v32 = vadd.f32 %v152_v30, %v56_v23  ;;  %165 = vst [vmem:[#allocation5] sm:$0xff] %v161_v31 }
  0x97   :  { %v160_v34 = vrot.slane %v153_v32, 4 }
  0x99   :  { %v162_v35 = vsel %vm62_vm0, %v133_v33, %v160_v34 }
  0x9a   :  { %166 = vst [vmem:[#allocation5 + $0x8] sm:$0xff] %v162_v35 }
  0x9b   :  { %177 = dma.vmem_to_hbm [thread:$0]  %s173_s2, 256, %s175_s24, [#allocation4]  }
  0x9c   :  { %248 = dma.done.wait [#allocation4], 256  }
  0x9d   :  { %249 = vsyncadd [#allocation4], 4294967040 }
  0x9e   :  { %182 = vsyncpa [#allocation3], 1 }
  0x9f   :  { %183 = vsyncpa [#allocation4], 1 }

</bundles_post_ra>
